<compile_context>
chip_gen: v7x
topology: tpu7x:2x2x1
jax: 0.10.0
libtpu: 0.0.40
codegen_flags: <defaults>
</compile_context>

<pallas_src>
import functools

import jax
import jax.numpy as jnp
from jax.experimental import pallas as pl
from jax.experimental.pallas import tpu as pltpu


def set2set_kernel(feat_ref, mask_ref, wih_q_ref, wih_r_ref, whh_ref, b_ref,
                   wout_q_ref, wout_r_ref, bout_ref, out_ref, *, n_iters):
    # feat_ref: (TB, Nmax, H)   mask_ref: (TB, Nmax)
    # wih_q/wih_r: (H, 4H)      whh: (H, 4H)      b: (1, 4H)  (= b_ih + b_hh)
    # wout_q/wout_r: (H, H)     bout: (1, H)      out: (TB, H)
    TB, N, H = feat_ref.shape

    feat = feat_ref[...]                                   # no f32 copy; MXU takes it natively
    mask = mask_ref[...].astype(jnp.float32)               # (TB, N)
    neg3 = ((1.0 - mask) * (-1e30))[:, None, :]            # hoisted masked-softmax offset (TB,1,N)

    wih_q = wih_q_ref[...]
    wih_r = wih_r_ref[...]
    whh = whh_ref[...]
    b = jnp.broadcast_to(b_ref[...], (TB, 4 * H))          # hoisted bias broadcast

    q = jnp.zeros((TB, H), jnp.float32)                    # LSTM output / first half of q_star
    r = jnp.zeros((TB, H), jnp.float32)                    # readout      / second half of q_star
    h = jnp.zeros((TB, H), jnp.float32)
    c = jnp.zeros((TB, H), jnp.float32)

    # Statically unrolled recurrence (n_iters is tiny, default 3).
    for _ in range(n_iters):
        # One LSTM step on input q_star = [q, r] (kept split => no lane concat).
        gates = (jnp.dot(q, wih_q, preferred_element_type=jnp.float32)
                 + jnp.dot(r, wih_r, preferred_element_type=jnp.float32)
                 + jnp.dot(h, whh, preferred_element_type=jnp.float32)
                 + b)                                      # (TB, 4H), lane-dense
        i_g = jax.nn.sigmoid(gates[:, 0 * H:1 * H])
        f_g = jax.nn.sigmoid(gates[:, 1 * H:2 * H])
        g_g = jnp.tanh(gates[:, 2 * H:3 * H])
        o_g = jax.nn.sigmoid(gates[:, 3 * H:4 * H])
        c = f_g * c + i_g * g_g
        h = o_g * jnp.tanh(c)
        q = h                                              # (TB, H)

        # Masked attention scores on the MXU (batched dot, q-tile of 1).
        e = jnp.einsum('bqh,bnh->bqn', q[:, None, :], feat,
                       preferred_element_type=jnp.float32) + neg3     # (TB, 1, N)
        e = e - jnp.max(e, axis=-1, keepdims=True)
        w = jnp.exp(e)                                     # masked terms -> exp(~-1e30) == 0

        # Unnormalized readout on the MXU, then one cheap (TB,1) reciprocal scale.
        r_un = jnp.einsum('bqn,bnh->bqh', w, feat,
                          preferred_element_type=jnp.float32)[:, 0, :]  # (TB, H)
        denom = jnp.maximum(jnp.sum(w, axis=-1), 1e-20)    # (TB, 1); clamp empty graphs
        r = r_un * pl.reciprocal(denom, approx=True)       # (TB, H)

    # Output Linear(2H -> H) on q_star = [q, r], weights pre-split in wrapper.
    out = (jnp.dot(q, wout_q_ref[...], preferred_element_type=jnp.float32)
           + jnp.dot(r, wout_r_ref[...], preferred_element_type=jnp.float32)
           + bout_ref[...])
    out_ref[...] = out.astype(out_ref.dtype)


def _pick_batch_tile(B, N, H, itemsize, budget_bytes=24 << 20):
    """Largest batch tile whose double-buffered (sublane/lane padded) feat block
    fits the budget; multiple of 8 (and dividing B) when B > tile."""
    n_pad = -(-N // 8) * 8
    h_pad = -(-H // 128) * 128
    per_row = 2 * n_pad * h_pad * itemsize                 # x2: pipeline double-buffer
    max_tb = max(8, budget_bytes // per_row)
    if B <= max_tb:
        return B
    tb = (min(max_tb, B) // 8) * 8
    while tb >= 8:
        if B % tb == 0:
            return tb
        tb -= 8
    return B   # odd batch that nothing divides: fall back to a single tile


def graph_set2set_pooling(feat, mask, w_ih, w_hh, b_ih, b_hh, w_out, b_out,
                          n_iters=3):
    """feat: (B, Nmax, H) dense node features, mask: (B, Nmax) in {0,1}.
    w_ih: (4H, 2H), w_hh: (4H, H), b_ih/b_hh: (4H,)  (torch.nn.LSTM, 1 layer)
    w_out: (H, 2H), b_out: (H,)                      (torch.nn.Linear)
    Returns (B, H)."""
    B, N, H = feat.shape
    # TODO(synk): Set2Set with set_2_set_n_layers > 1 (stacked LSTM) not implemented;
    #             the module's default (and this kernel) uses a single LSTM layer.
    # TODO(synk): for H < 128 the lane axis of feat/q/h/c is padded (~128/H VMEM
    #             inflation, masked output stores); a lane-dense repack (pad H to 128
    #             or (B, H, N) layout) is not applied here.

    # Pre-transpose / pre-split weights so the kernel never concatenates on the
    # lane axis and the gate matmul hits the MXU row-major.
    wih_t = jnp.transpose(w_ih)            # (2H, 4H)
    wih_q, wih_r = wih_t[:H], wih_t[H:]    # (H, 4H) each
    whh_t = jnp.transpose(w_hh)            # (H, 4H)
    b = (b_ih + b_hh).reshape(1, 4 * H).astype(jnp.float32)   # fold both LSTM biases once
    wout_t = jnp.transpose(w_out)          # (2H, H)
    wout_q, wout_r = wout_t[:H], wout_t[H:]
    bout = b_out.reshape(1, H).astype(jnp.float32)

    TB = _pick_batch_tile(B, N, H, feat.dtype.itemsize)
    grid = (pl.cdiv(B, TB),)

    const2 = lambda i: (0, 0)
    in_specs = [
        pl.BlockSpec((TB, N, H), lambda i: (i, 0, 0)),     # feat: pipelined over batch
        pl.BlockSpec((TB, N), lambda i: (i, 0)),           # mask: pipelined over batch
        pl.BlockSpec((H, 4 * H), const2),                  # weights: VMEM-resident
        pl.BlockSpec((H, 4 * H), const2),
        pl.BlockSpec((H, 4 * H), const2),
        pl.BlockSpec((1, 4 * H), const2),
        pl.BlockSpec((H, H), const2),
        pl.BlockSpec((H, H), const2),
        pl.BlockSpec((1, H), const2),
    ]
    out_specs = pl.BlockSpec((TB, H), lambda i: (i, 0))

    # VMEM budget: double-buffered feat/mask tiles (lane/sublane padded) + resident
    # weights + headroom; capped below v7x's 64 MiB physical VMEM.
    n_pad = -(-N // 8) * 8
    h_pad = -(-H // 128) * 128
    tb_pad = -(-TB // 8) * 8
    feat_tile = tb_pad * n_pad * h_pad * feat.dtype.itemsize
    mask_tile = tb_pad * max(n_pad, 128) * mask.dtype.itemsize
    weight_bytes = 4 * (3 * H * 4 * H + 4 * H + 2 * H * H + H)
    vmem_bytes = 2 * (feat_tile + mask_tile) + weight_bytes + (4 << 20)
    vmem_bytes = int(min(max(vmem_bytes, 16 << 20), 48 << 20))

    kernel = functools.partial(set2set_kernel, n_iters=n_iters)
    return pl.pallas_call(
        kernel,
        out_shape=jax.ShapeDtypeStruct((B, H), feat.dtype),
        grid=grid,
        in_specs=in_specs,
        out_specs=out_specs,
        compiler_params=pltpu.CompilerParams(
            dimension_semantics=("parallel",),       # megacore sharding on v7x
            vmem_limit_bytes=vmem_bytes),
    )(feat, mask, wih_q, wih_r, whh_t, b, wout_q, wout_r, bout)


def graph_set2set_pooling_ref(feat, mask, w_ih, w_hh, b_ih, b_hh, w_out, b_out,
                              n_iters=3):
    """Pure-JAX reference mirroring dgl.nn.Set2Set + nn.Linear (eval mode)."""
    B, N, H = feat.shape
    feat = feat.astype(jnp.float32)
    h = jnp.zeros((B, H), jnp.float32)
    c = jnp.zeros((B, H), jnp.float32)
    q_star = jnp.zeros((B, 2 * H), jnp.float32)
    for _ in range(n_iters):
        gates = q_star @ w_ih.T + b_ih + h @ w_hh.T + b_hh
        i = jax.nn.sigmoid(gates[:, :H])
        f = jax.nn.sigmoid(gates[:, H:2 * H])
        g = jnp.tanh(gates[:, 2 * H:3 * H])
        o = jax.nn.sigmoid(gates[:, 3 * H:])
        c = f * c + i * g
        h = o * jnp.tanh(c)
        q = h
        e = jnp.sum(feat * q[:, None, :], axis=-1)
        e = jnp.where(mask > 0, e, -jnp.inf)
        alpha = jax.nn.softmax(e, axis=-1)
        alpha = jnp.where(mask > 0, alpha, 0.0)
        readout = jnp.sum(alpha[:, :, None] * feat, axis=1)
        q_star = jnp.concatenate([q, readout], axis=-1)
    return q_star @ w_out.T + b_out


if __name__ == "__main__":
    B, Nmax, H = 2, 16, 32          # graphs in batch, max nodes per graph, hidden_size
    n_iters = 3                      # set_2_set_n_iters default

    key = jax.random.PRNGKey(0)
    kf, k1, k2, k3, k4, k5, k6 = jax.random.split(key, 7)

    # Batched "graph": graph 0 has 16 nodes, graph 1 has 11 nodes (padded + masked).
    counts = jnp.array([16, 11], jnp.int32)
    mask = (jnp.arange(Nmax)[None, :] < counts[:, None]).astype(jnp.float32)
    feat = jax.random.normal(kf, (B, Nmax, H), jnp.float32) * mask[:, :, None]

    bound_lstm = 1.0 / (H ** 0.5)            # torch.nn.LSTM default init bound
    w_ih = jax.random.uniform(k1, (4 * H, 2 * H), jnp.float32, -bound_lstm, bound_lstm)
    w_hh = jax.random.uniform(k2, (4 * H, H), jnp.float32, -bound_lstm, bound_lstm)
    b_ih = jax.random.uniform(k3, (4 * H,), jnp.float32, -bound_lstm, bound_lstm)
    b_hh = jax.random.uniform(k4, (4 * H,), jnp.float32, -bound_lstm, bound_lstm)

    bound_lin = 1.0 / ((2 * H) ** 0.5)       # torch.nn.Linear default init bound
    w_out = jax.random.uniform(k5, (H, 2 * H), jnp.float32, -bound_lin, bound_lin)
    b_out = jax.random.uniform(k6, (H,), jnp.float32, -bound_lin, bound_lin)

    fn = jax.jit(lambda *a: graph_set2set_pooling(*a, n_iters=n_iters))
    out = jax.block_until_ready(fn(feat, mask, w_ih, w_hh, b_ih, b_hh, w_out, b_out))

    ref = graph_set2set_pooling_ref(feat, mask, w_ih, w_hh, b_ih, b_hh, w_out, b_out,
                                    n_iters=n_iters)
    assert out.shape == (B, H)
    assert bool(jnp.allclose(out, ref, atol=3e-3, rtol=3e-3)), "mismatch vs reference"
    print("KERNEL_OK")
</pallas_src>

<mosaic_0001>
module attributes {stable_mosaic.version = 11 : i64} {
  func.func @set2set_kernel(%arg0: i32, %arg1: memref<2x16x32xf32, #tpu.memory_space<vmem>>, %arg2: memref<2x16xf32, #tpu.memory_space<vmem>>, %arg3: memref<32x128xf32, #tpu.memory_space<vmem>>, %arg4: memref<32x128xf32, #tpu.memory_space<vmem>>, %arg5: memref<32x128xf32, #tpu.memory_space<vmem>>, %arg6: memref<1x128xf32, #tpu.memory_space<vmem>>, %arg7: memref<32x32xf32, #tpu.memory_space<vmem>>, %arg8: memref<32x32xf32, #tpu.memory_space<vmem>>, %arg9: memref<1x32xf32, #tpu.memory_space<vmem>>, %arg10: memref<2x32xf32, #tpu.memory_space<vmem>>) attributes {dimension_semantics = [#tpu.dimension_semantics<parallel>], iteration_bounds = array<i64: 1>, scalar_prefetch = 0 : i64, scratch_operands = 0 : i64, tpu.core_type = #tpu.core_type<tc>, window_params = [{transform_indices = @transform_0, window_bounds = array<i64: 2, 16, 32>}, {transform_indices = @transform_1, window_bounds = array<i64: 2, 16>}, {pipeline_mode = #tpu.pipeline_mode<synchronous>, transform_indices = @transform_2, window_bounds = array<i64: 32, 128>}, {pipeline_mode = #tpu.pipeline_mode<synchronous>, transform_indices = @transform_3, window_bounds = array<i64: 32, 128>}, {pipeline_mode = #tpu.pipeline_mode<synchronous>, transform_indices = @transform_4, window_bounds = array<i64: 32, 128>}, {pipeline_mode = #tpu.pipeline_mode<synchronous>, transform_indices = @transform_5, window_bounds = array<i64: 1, 128>}, {pipeline_mode = #tpu.pipeline_mode<synchronous>, transform_indices = @transform_6, window_bounds = array<i64: 32, 32>}, {pipeline_mode = #tpu.pipeline_mode<synchronous>, transform_indices = @transform_7, window_bounds = array<i64: 32, 32>}, {pipeline_mode = #tpu.pipeline_mode<synchronous>, transform_indices = @transform_8, window_bounds = array<i64: 1, 32>}, {transform_indices = @transform_9, window_bounds = array<i64: 2, 32>}]} {
    %c0 = arith.constant 0 : index
    %c0_0 = arith.constant 0 : index
    %c0_1 = arith.constant 0 : index
    %0 = vector.load %arg1[%c0, %c0_0, %c0_1] : memref<2x16x32xf32, #tpu.memory_space<vmem>>, vector<2x16x32xf32>
    %c0_2 = arith.constant 0 : index
    %c0_3 = arith.constant 0 : index
    %1 = vector.load %arg2[%c0_2, %c0_3] : memref<2x16xf32, #tpu.memory_space<vmem>>, vector<2x16xf32>
    %cst = arith.constant 1.000000e+00 : f32
    %2 = vector.broadcast %cst : f32 to vector<2x16xf32>
    %3 = arith.subf %2, %1 : vector<2x16xf32>
    %cst_4 = arith.constant -1.000000e+30 : f32
    %4 = vector.broadcast %cst_4 : f32 to vector<2x16xf32>
    %5 = arith.mulf %3, %4 : vector<2x16xf32>
    %6 = vector.shape_cast %5 : vector<2x16xf32> to vector<2x1x16xf32>
    %c0_5 = arith.constant 0 : index
    %c0_6 = arith.constant 0 : index
    %7 = vector.load %arg3[%c0_5, %c0_6] : memref<32x128xf32, #tpu.memory_space<vmem>>, vector<32x128xf32>
    %c0_7 = arith.constant 0 : index
    %c0_8 = arith.constant 0 : index
    %8 = vector.load %arg4[%c0_7, %c0_8] : memref<32x128xf32, #tpu.memory_space<vmem>>, vector<32x128xf32>
    %c0_9 = arith.constant 0 : index
    %c0_10 = arith.constant 0 : index
    %9 = vector.load %arg5[%c0_9, %c0_10] : memref<32x128xf32, #tpu.memory_space<vmem>>, vector<32x128xf32>
    %c0_11 = arith.constant 0 : index
    %c0_12 = arith.constant 0 : index
    %10 = vector.load %arg6[%c0_11, %c0_12] : memref<1x128xf32, #tpu.memory_space<vmem>>, vector<1x128xf32>
    %11 = vector.shape_cast %10 : vector<1x128xf32> to vector<1x128xf32>
    %12 = vector.broadcast %11 : vector<1x128xf32> to vector<2x128xf32>
    %cst_13 = arith.constant 0.000000e+00 : f32
    %13 = vector.broadcast %cst_13 : f32 to vector<2x32xf32>
    %cst_14 = arith.constant 0.000000e+00 : f32
    %14 = vector.broadcast %cst_14 : f32 to vector<2x32xf32>
    %cst_15 = arith.constant 0.000000e+00 : f32
    %15 = vector.broadcast %cst_15 : f32 to vector<2x32xf32>
    %cst_16 = arith.constant 0.000000e+00 : f32
    %16 = vector.broadcast %cst_16 : f32 to vector<2x32xf32>
    %cst_17 = arith.constant dense<0.000000e+00> : vector<2x128xf32>
    %17 = tpu.matmul %13, %7, %cst_17 {dimension_numbers = #tpu.dot_dimension_numbers<[1], [0], [0], [1], [0, 0, 1, 1], [], []>} : vector<2x32xf32>, vector<32x128xf32>, vector<2x128xf32> -> vector<2x128xf32>
    %cst_18 = arith.constant dense<0.000000e+00> : vector<2x128xf32>
    %18 = tpu.matmul %14, %8, %cst_18 {dimension_numbers = #tpu.dot_dimension_numbers<[1], [0], [0], [1], [0, 0, 1, 1], [], []>} : vector<2x32xf32>, vector<32x128xf32>, vector<2x128xf32> -> vector<2x128xf32>
    %19 = arith.addf %17, %18 : vector<2x128xf32>
    %cst_19 = arith.constant dense<0.000000e+00> : vector<2x128xf32>
    %20 = tpu.matmul %15, %9, %cst_19 {dimension_numbers = #tpu.dot_dimension_numbers<[1], [0], [0], [1], [0, 0, 1, 1], [], []>} : vector<2x32xf32>, vector<32x128xf32>, vector<2x128xf32> -> vector<2x128xf32>
    %21 = arith.addf %19, %20 : vector<2x128xf32>
    %22 = arith.addf %21, %12 : vector<2x128xf32>
    %23 = vector.extract_strided_slice %22 {offsets = [0, 0], sizes = [2, 32], strides = [1, 1]} : vector<2x128xf32> to vector<2x32xf32>
    %24 = arith.negf %23 : vector<2x32xf32>
    %25 = math.exp %24 : vector<2x32xf32>
    %cst_20 = arith.constant 1.000000e+00 : f32
    %26 = vector.broadcast %cst_20 : f32 to vector<2x32xf32>
    %27 = arith.addf %26, %25 : vector<2x32xf32>
    %28 = arith.divf %26, %27 : vector<2x32xf32>
    %29 = vector.extract_strided_slice %22 {offsets = [0, 32], sizes = [2, 32], strides = [1, 1]} : vector<2x128xf32> to vector<2x32xf32>
    %30 = arith.negf %29 : vector<2x32xf32>
    %31 = math.exp %30 : vector<2x32xf32>
    %cst_21 = arith.constant 1.000000e+00 : f32
    %32 = vector.broadcast %cst_21 : f32 to vector<2x32xf32>
    %33 = arith.addf %32, %31 : vector<2x32xf32>
    %34 = arith.divf %32, %33 : vector<2x32xf32>
    %35 = vector.extract_strided_slice %22 {offsets = [0, 64], sizes = [2, 32], strides = [1, 1]} : vector<2x128xf32> to vector<2x32xf32>
    %36 = math.tanh %35 : vector<2x32xf32>
    %37 = vector.extract_strided_slice %22 {offsets = [0, 96], sizes = [2, 32], strides = [1, 1]} : vector<2x128xf32> to vector<2x32xf32>
    %38 = arith.negf %37 : vector<2x32xf32>
    %39 = math.exp %38 : vector<2x32xf32>
    %cst_22 = arith.constant 1.000000e+00 : f32
    %40 = vector.broadcast %cst_22 : f32 to vector<2x32xf32>
    %41 = arith.addf %40, %39 : vector<2x32xf32>
    %42 = arith.divf %40, %41 : vector<2x32xf32>
    %43 = arith.mulf %34, %16 : vector<2x32xf32>
    %44 = arith.mulf %28, %36 : vector<2x32xf32>
    %45 = arith.addf %43, %44 : vector<2x32xf32>
    %46 = math.tanh %45 : vector<2x32xf32>
    %47 = arith.mulf %42, %46 : vector<2x32xf32>
    %48 = vector.shape_cast %47 : vector<2x32xf32> to vector<2x1x32xf32>
    "tpu.trace_start"() <{level = 10 : i32, message = "bqh,bnh->bqn"}> : () -> ()
    %cst_23 = arith.constant dense<0.000000e+00> : vector<2x1x16xf32>
    %49 = tpu.matmul %48, %0, %cst_23 {dimension_numbers = #tpu.dot_dimension_numbers<[2], [2], [1], [1], [0, 0, 0, 1, 1, 1], [0], [0]>} : vector<2x1x32xf32>, vector<2x16x32xf32>, vector<2x1x16xf32> -> vector<2x1x16xf32>
    "tpu.trace_stop"() : () -> ()
    %50 = arith.addf %49, %6 : vector<2x1x16xf32>
    %cst_24 = arith.constant dense<0xFF800000> : vector<2x1xf32>
    %51 = vector.multi_reduction <maximumf>, %50, %cst_24 [2] : vector<2x1x16xf32> to vector<2x1xf32>
    %52 = vector.shape_cast %51 : vector<2x1xf32> to vector<2x1x1xf32>
    %53 = vector.broadcast %52 : vector<2x1x1xf32> to vector<2x1x16xf32>
    %54 = arith.subf %50, %53 : vector<2x1x16xf32>
    %55 = math.exp %54 : vector<2x1x16xf32>
    "tpu.trace_start"() <{level = 10 : i32, message = "bqn,bnh->bqh"}> : () -> ()
    %cst_25 = arith.constant dense<0.000000e+00> : vector<2x1x32xf32>
    %56 = tpu.matmul %55, %0, %cst_25 {dimension_numbers = #tpu.dot_dimension_numbers<[2], [1], [1], [2], [0, 0, 0, 1, 1, 2], [0], [0]>} : vector<2x1x16xf32>, vector<2x16x32xf32>, vector<2x1x32xf32> -> vector<2x1x32xf32>
    "tpu.trace_stop"() : () -> ()
    %57 = vector.shape_cast %56 : vector<2x1x32xf32> to vector<2x32xf32>
    %cst_26 = arith.constant dense<0.000000e+00> : vector<2x1xf32>
    %58 = vector.multi_reduction <add>, %55, %cst_26 [2] : vector<2x1x16xf32> to vector<2x1xf32>
    %cst_27 = arith.constant 9.99999968E-21 : f32
    %59 = vector.broadcast %cst_27 : f32 to vector<2x1xf32>
    %60 = arith.maximumf %58, %59 : vector<2x1xf32>
    %61 = tpu.reciprocal %60 {approx = true} : vector<2x1xf32> -> vector<2x1xf32>
    %62 = vector.broadcast %61 : vector<2x1xf32> to vector<2x32xf32>
    %63 = arith.mulf %57, %62 : vector<2x32xf32>
    %cst_28 = arith.constant dense<0.000000e+00> : vector<2x128xf32>
    %64 = tpu.matmul %47, %7, %cst_28 {dimension_numbers = #tpu.dot_dimension_numbers<[1], [0], [0], [1], [0, 0, 1, 1], [], []>} : vector<2x32xf32>, vector<32x128xf32>, vector<2x128xf32> -> vector<2x128xf32>
    %cst_29 = arith.constant dense<0.000000e+00> : vector<2x128xf32>
    %65 = tpu.matmul %63, %8, %cst_29 {dimension_numbers = #tpu.dot_dimension_numbers<[1], [0], [0], [1], [0, 0, 1, 1], [], []>} : vector<2x32xf32>, vector<32x128xf32>, vector<2x128xf32> -> vector<2x128xf32>
    %66 = arith.addf %64, %65 : vector<2x128xf32>
    %cst_30 = arith.constant dense<0.000000e+00> : vector<2x128xf32>
    %67 = tpu.matmul %47, %9, %cst_30 {dimension_numbers = #tpu.dot_dimension_numbers<[1], [0], [0], [1], [0, 0, 1, 1], [], []>} : vector<2x32xf32>, vector<32x128xf32>, vector<2x128xf32> -> vector<2x128xf32>
    %68 = arith.addf %66, %67 : vector<2x128xf32>
    %69 = arith.addf %68, %12 : vector<2x128xf32>
    %70 = vector.extract_strided_slice %69 {offsets = [0, 0], sizes = [2, 32], strides = [1, 1]} : vector<2x128xf32> to vector<2x32xf32>
    %71 = arith.negf %70 : vector<2x32xf32>
    %72 = math.exp %71 : vector<2x32xf32>
    %cst_31 = arith.constant 1.000000e+00 : f32
    %73 = vector.broadcast %cst_31 : f32 to vector<2x32xf32>
    %74 = arith.addf %73, %72 : vector<2x32xf32>
    %75 = arith.divf %73, %74 : vector<2x32xf32>
    %76 = vector.extract_strided_slice %69 {offsets = [0, 32], sizes = [2, 32], strides = [1, 1]} : vector<2x128xf32> to vector<2x32xf32>
    %77 = arith.negf %76 : vector<2x32xf32>
    %78 = math.exp %77 : vector<2x32xf32>
    %cst_32 = arith.constant 1.000000e+00 : f32
    %79 = vector.broadcast %cst_32 : f32 to vector<2x32xf32>
    %80 = arith.addf %79, %78 : vector<2x32xf32>
    %81 = arith.divf %79, %80 : vector<2x32xf32>
    %82 = vector.extract_strided_slice %69 {offsets = [0, 64], sizes = [2, 32], strides = [1, 1]} : vector<2x128xf32> to vector<2x32xf32>
    %83 = math.tanh %82 : vector<2x32xf32>
    %84 = vector.extract_strided_slice %69 {offsets = [0, 96], sizes = [2, 32], strides = [1, 1]} : vector<2x128xf32> to vector<2x32xf32>
    %85 = arith.negf %84 : vector<2x32xf32>
    %86 = math.exp %85 : vector<2x32xf32>
    %cst_33 = arith.constant 1.000000e+00 : f32
    %87 = vector.broadcast %cst_33 : f32 to vector<2x32xf32>
    %88 = arith.addf %87, %86 : vector<2x32xf32>
    %89 = arith.divf %87, %88 : vector<2x32xf32>
    %90 = arith.mulf %81, %45 : vector<2x32xf32>
    %91 = arith.mulf %75, %83 : vector<2x32xf32>
    %92 = arith.addf %90, %91 : vector<2x32xf32>
    %93 = math.tanh %92 : vector<2x32xf32>
    %94 = arith.mulf %89, %93 : vector<2x32xf32>
    %95 = vector.shape_cast %94 : vector<2x32xf32> to vector<2x1x32xf32>
    "tpu.trace_start"() <{level = 10 : i32, message = "bqh,bnh->bqn"}> : () -> ()
    %cst_34 = arith.constant dense<0.000000e+00> : vector<2x1x16xf32>
    %96 = tpu.matmul %95, %0, %cst_34 {dimension_numbers = #tpu.dot_dimension_numbers<[2], [2], [1], [1], [0, 0, 0, 1, 1, 1], [0], [0]>} : vector<2x1x32xf32>, vector<2x16x32xf32>, vector<2x1x16xf32> -> vector<2x1x16xf32>
    "tpu.trace_stop"() : () -> ()
    %97 = arith.addf %96, %6 : vector<2x1x16xf32>
    %cst_35 = arith.constant dense<0xFF800000> : vector<2x1xf32>
    %98 = vector.multi_reduction <maximumf>, %97, %cst_35 [2] : vector<2x1x16xf32> to vector<2x1xf32>
    %99 = vector.shape_cast %98 : vector<2x1xf32> to vector<2x1x1xf32>
    %100 = vector.broadcast %99 : vector<2x1x1xf32> to vector<2x1x16xf32>
    %101 = arith.subf %97, %100 : vector<2x1x16xf32>
    %102 = math.exp %101 : vector<2x1x16xf32>
    "tpu.trace_start"() <{level = 10 : i32, message = "bqn,bnh->bqh"}> : () -> ()
    %cst_36 = arith.constant dense<0.000000e+00> : vector<2x1x32xf32>
    %103 = tpu.matmul %102, %0, %cst_36 {dimension_numbers = #tpu.dot_dimension_numbers<[2], [1], [1], [2], [0, 0, 0, 1, 1, 2], [0], [0]>} : vector<2x1x16xf32>, vector<2x16x32xf32>, vector<2x1x32xf32> -> vector<2x1x32xf32>
    "tpu.trace_stop"() : () -> ()
    %104 = vector.shape_cast %103 : vector<2x1x32xf32> to vector<2x32xf32>
    %cst_37 = arith.constant dense<0.000000e+00> : vector<2x1xf32>
    %105 = vector.multi_reduction <add>, %102, %cst_37 [2] : vector<2x1x16xf32> to vector<2x1xf32>
    %cst_38 = arith.constant 9.99999968E-21 : f32
    %106 = vector.broadcast %cst_38 : f32 to vector<2x1xf32>
    %107 = arith.maximumf %105, %106 : vector<2x1xf32>
    %108 = tpu.reciprocal %107 {approx = true} : vector<2x1xf32> -> vector<2x1xf32>
    %109 = vector.broadcast %108 : vector<2x1xf32> to vector<2x32xf32>
    %110 = arith.mulf %104, %109 : vector<2x32xf32>
    %cst_39 = arith.constant dense<0.000000e+00> : vector<2x128xf32>
    %111 = tpu.matmul %94, %7, %cst_39 {dimension_numbers = #tpu.dot_dimension_numbers<[1], [0], [0], [1], [0, 0, 1, 1], [], []>} : vector<2x32xf32>, vector<32x128xf32>, vector<2x128xf32> -> vector<2x128xf32>
    %cst_40 = arith.constant dense<0.000000e+00> : vector<2x128xf32>
    %112 = tpu.matmul %110, %8, %cst_40 {dimension_numbers = #tpu.dot_dimension_numbers<[1], [0], [0], [1], [0, 0, 1, 1], [], []>} : vector<2x32xf32>, vector<32x128xf32>, vector<2x128xf32> -> vector<2x128xf32>
    %113 = arith.addf %111, %112 : vector<2x128xf32>
    %cst_41 = arith.constant dense<0.000000e+00> : vector<2x128xf32>
    %114 = tpu.matmul %94, %9, %cst_41 {dimension_numbers = #tpu.dot_dimension_numbers<[1], [0], [0], [1], [0, 0, 1, 1], [], []>} : vector<2x32xf32>, vector<32x128xf32>, vector<2x128xf32> -> vector<2x128xf32>
    %115 = arith.addf %113, %114 : vector<2x128xf32>
    %116 = arith.addf %115, %12 : vector<2x128xf32>
    %117 = vector.extract_strided_slice %116 {offsets = [0, 0], sizes = [2, 32], strides = [1, 1]} : vector<2x128xf32> to vector<2x32xf32>
    %118 = arith.negf %117 : vector<2x32xf32>
    %119 = math.exp %118 : vector<2x32xf32>
    %cst_42 = arith.constant 1.000000e+00 : f32
    %120 = vector.broadcast %cst_42 : f32 to vector<2x32xf32>
    %121 = arith.addf %120, %119 : vector<2x32xf32>
    %122 = arith.divf %120, %121 : vector<2x32xf32>
    %123 = vector.extract_strided_slice %116 {offsets = [0, 32], sizes = [2, 32], strides = [1, 1]} : vector<2x128xf32> to vector<2x32xf32>
    %124 = arith.negf %123 : vector<2x32xf32>
    %125 = math.exp %124 : vector<2x32xf32>
    %cst_43 = arith.constant 1.000000e+00 : f32
    %126 = vector.broadcast %cst_43 : f32 to vector<2x32xf32>
    %127 = arith.addf %126, %125 : vector<2x32xf32>
    %128 = arith.divf %126, %127 : vector<2x32xf32>
    %129 = vector.extract_strided_slice %116 {offsets = [0, 64], sizes = [2, 32], strides = [1, 1]} : vector<2x128xf32> to vector<2x32xf32>
    %130 = math.tanh %129 : vector<2x32xf32>
    %131 = vector.extract_strided_slice %116 {offsets = [0, 96], sizes = [2, 32], strides = [1, 1]} : vector<2x128xf32> to vector<2x32xf32>
    %132 = arith.negf %131 : vector<2x32xf32>
    %133 = math.exp %132 : vector<2x32xf32>
    %cst_44 = arith.constant 1.000000e+00 : f32
    %134 = vector.broadcast %cst_44 : f32 to vector<2x32xf32>
    %135 = arith.addf %134, %133 : vector<2x32xf32>
    %136 = arith.divf %134, %135 : vector<2x32xf32>
    %137 = arith.mulf %128, %92 : vector<2x32xf32>
    %138 = arith.mulf %122, %130 : vector<2x32xf32>
    %139 = arith.addf %137, %138 : vector<2x32xf32>
    %140 = math.tanh %139 : vector<2x32xf32>
    %141 = arith.mulf %136, %140 : vector<2x32xf32>
    %142 = vector.shape_cast %141 : vector<2x32xf32> to vector<2x1x32xf32>
    "tpu.trace_start"() <{level = 10 : i32, message = "bqh,bnh->bqn"}> : () -> ()
    %cst_45 = arith.constant dense<0.000000e+00> : vector<2x1x16xf32>
    %143 = tpu.matmul %142, %0, %cst_45 {dimension_numbers = #tpu.dot_dimension_numbers<[2], [2], [1], [1], [0, 0, 0, 1, 1, 1], [0], [0]>} : vector<2x1x32xf32>, vector<2x16x32xf32>, vector<2x1x16xf32> -> vector<2x1x16xf32>
    "tpu.trace_stop"() : () -> ()
    %144 = arith.addf %143, %6 : vector<2x1x16xf32>
    %cst_46 = arith.constant dense<0xFF800000> : vector<2x1xf32>
    %145 = vector.multi_reduction <maximumf>, %144, %cst_46 [2] : vector<2x1x16xf32> to vector<2x1xf32>
    %146 = vector.shape_cast %145 : vector<2x1xf32> to vector<2x1x1xf32>
    %147 = vector.broadcast %146 : vector<2x1x1xf32> to vector<2x1x16xf32>
    %148 = arith.subf %144, %147 : vector<2x1x16xf32>
    %149 = math.exp %148 : vector<2x1x16xf32>
    "tpu.trace_start"() <{level = 10 : i32, message = "bqn,bnh->bqh"}> : () -> ()
    %cst_47 = arith.constant dense<0.000000e+00> : vector<2x1x32xf32>
    %150 = tpu.matmul %149, %0, %cst_47 {dimension_numbers = #tpu.dot_dimension_numbers<[2], [1], [1], [2], [0, 0, 0, 1, 1, 2], [0], [0]>} : vector<2x1x16xf32>, vector<2x16x32xf32>, vector<2x1x32xf32> -> vector<2x1x32xf32>
    "tpu.trace_stop"() : () -> ()
    %151 = vector.shape_cast %150 : vector<2x1x32xf32> to vector<2x32xf32>
    %cst_48 = arith.constant dense<0.000000e+00> : vector<2x1xf32>
    %152 = vector.multi_reduction <add>, %149, %cst_48 [2] : vector<2x1x16xf32> to vector<2x1xf32>
    %cst_49 = arith.constant 9.99999968E-21 : f32
    %153 = vector.broadcast %cst_49 : f32 to vector<2x1xf32>
    %154 = arith.maximumf %152, %153 : vector<2x1xf32>
    %155 = tpu.reciprocal %154 {approx = true} : vector<2x1xf32> -> vector<2x1xf32>
    %156 = vector.broadcast %155 : vector<2x1xf32> to vector<2x32xf32>
    %157 = arith.mulf %151, %156 : vector<2x32xf32>
    %c0_50 = arith.constant 0 : index
    %c0_51 = arith.constant 0 : index
    %158 = vector.load %arg7[%c0_50, %c0_51] : memref<32x32xf32, #tpu.memory_space<vmem>>, vector<32x32xf32>
    %cst_52 = arith.constant dense<0.000000e+00> : vector<2x32xf32>
    %159 = tpu.matmul %141, %158, %cst_52 {dimension_numbers = #tpu.dot_dimension_numbers<[1], [0], [0], [1], [0, 0, 1, 1], [], []>} : vector<2x32xf32>, vector<32x32xf32>, vector<2x32xf32> -> vector<2x32xf32>
    %c0_53 = arith.constant 0 : index
    %c0_54 = arith.constant 0 : index
    %160 = vector.load %arg8[%c0_53, %c0_54] : memref<32x32xf32, #tpu.memory_space<vmem>>, vector<32x32xf32>
    %cst_55 = arith.constant dense<0.000000e+00> : vector<2x32xf32>
    %161 = tpu.matmul %157, %160, %cst_55 {dimension_numbers = #tpu.dot_dimension_numbers<[1], [0], [0], [1], [0, 0, 1, 1], [], []>} : vector<2x32xf32>, vector<32x32xf32>, vector<2x32xf32> -> vector<2x32xf32>
    %162 = arith.addf %159, %161 : vector<2x32xf32>
    %c0_56 = arith.constant 0 : index
    %c0_57 = arith.constant 0 : index
    %163 = vector.load %arg9[%c0_56, %c0_57] : memref<1x32xf32, #tpu.memory_space<vmem>>, vector<1x32xf32>
    %164 = vector.broadcast %163 : vector<1x32xf32> to vector<2x32xf32>
    %165 = arith.addf %162, %164 : vector<2x32xf32>
    %c0_58 = arith.constant 0 : index
    %c0_59 = arith.constant 0 : index
    %166 = vector.load %arg10[%c0_58, %c0_59] : memref<2x32xf32, #tpu.memory_space<vmem>>, vector<2x32xf32>
    tpu.vector_store %arg10[%c0_58, %c0_59], %165 {strides = array<i32>} : memref<2x32xf32, #tpu.memory_space<vmem>>, vector<2x32xf32>,
    return
  }
  func.func @transform_0(%arg0: i32) -> (i32, i32, i32) {
    %c0_i32 = arith.constant 0 : i32
    %c0_i32_0 = arith.constant 0 : i32
    %c0_i32_1 = arith.constant 0 : i32
    return %arg0, %c0_i32, %c0_i32_0 : i32, i32, i32
  }
  func.func @transform_1(%arg0: i32) -> (i32, i32) {
    %c0_i32 = arith.constant 0 : i32
    %c0_i32_0 = arith.constant 0 : i32
    return %arg0, %c0_i32 : i32, i32
  }
  func.func @transform_2(%arg0: i32) -> (i32, i32) {
    %c0_i32 = arith.constant 0 : i32
    %c0_i32_0 = arith.constant 0 : i32
    %c0_i32_1 = arith.constant 0 : i32
    return %c0_i32, %c0_i32_0 : i32, i32
  }
  func.func @transform_3(%arg0: i32) -> (i32, i32) {
    %c0_i32 = arith.constant 0 : i32
    %c0_i32_0 = arith.constant 0 : i32
    %c0_i32_1 = arith.constant 0 : i32
    return %c0_i32, %c0_i32_0 : i32, i32
  }
  func.func @transform_4(%arg0: i32) -> (i32, i32) {
    %c0_i32 = arith.constant 0 : i32
    %c0_i32_0 = arith.constant 0 : i32
    %c0_i32_1 = arith.constant 0 : i32
    return %c0_i32, %c0_i32_0 : i32, i32
  }
  func.func @transform_5(%arg0: i32) -> (i32, i32) {
    %c0_i32 = arith.constant 0 : i32
    %c0_i32_0 = arith.constant 0 : i32
    %c0_i32_1 = arith.constant 0 : i32
    return %c0_i32, %c0_i32_0 : i32, i32
  }
  func.func @transform_6(%arg0: i32) -> (i32, i32) {
    %c0_i32 = arith.constant 0 : i32
    %c0_i32_0 = arith.constant 0 : i32
    %c0_i32_1 = arith.constant 0 : i32
    return %c0_i32, %c0_i32_0 : i32, i32
  }
  func.func @transform_7(%arg0: i32) -> (i32, i32) {
    %c0_i32 = arith.constant 0 : i32
    %c0_i32_0 = arith.constant 0 : i32
    %c0_i32_1 = arith.constant 0 : i32
    return %c0_i32, %c0_i32_0 : i32, i32
  }
  func.func @transform_8(%arg0: i32) -> (i32, i32) {
    %c0_i32 = arith.constant 0 : i32
    %c0_i32_0 = arith.constant 0 : i32
    %c0_i32_1 = arith.constant 0 : i32
    return %c0_i32, %c0_i32_0 : i32, i32
  }
  func.func @transform_9(%arg0: i32) -> (i32, i32) {
    %c0_i32 = arith.constant 0 : i32
    %c0_i32_0 = arith.constant 0 : i32
    return %arg0, %c0_i32 : i32, i32
  }
}

</mosaic_0001>

<bundles_post_ra>
// kernel: _lambda_.1
= control target key start
LH: loop header
LB: loop body
LE: loop exit
PB: predicated region body
PF: predicated region fallthrough
CT: control target
= control target key end

     0   :  { %v2604_v3 = vmov 0.0|0.0   ;;  %vm2605_vm0 = vmmov 0   ;;  %v2606_v11 = vmov 0.0   ;;  %s3009_s0 = inlined_call_operand.vmem [shape: f32[2,16,32], index: 0, kind: input, shape index: {}]   ;;  %s3010_s1 = inlined_call_operand.vmem [shape: f32[2,16], index: 1, kind: input, shape index: {}]   ;;  %s3011_s2 = inlined_call_operand.vmem [shape: f32[32,128], index: 2, kind: input, shape index: {}]   ;;  %s3012_s3 = inlined_call_operand.vmem [shape: f32[32,128], index: 3, kind: input, shape index: {}]   ;;  %s3013_s4 = inlined_call_operand.vmem [shape: f32[32,128], index: 4, kind: input, shape index: {}]   ;;  %s3014_s5 = inlined_call_operand.vmem [shape: f32[1,128], index: 5, kind: input, shape index: {}]   ;;  %s3015_s6 = inlined_call_operand.vmem [shape: f32[32,32], index: 6, kind: input, shape index: {}]   ;;  %s3016_s7 = inlined_call_operand.vmem [shape: f32[32,32], index: 7, kind: input, shape index: {}]   ;;  %s3017_s8 = inlined_call_operand.vmem [shape: f32[1,32], index: 8, kind: input, shape index: {}]   ;;  %s3018_s9 = inlined_call_operand.hbm [shape: f32[2,32], index: 9, kind: output, shape index: {}]  }
   0x1   :  { %v69_v0 = vld [vmem:[%s3012_s3] sm:$0xff]  ;;  %v70_v1 = vld [vmem:[%s3012_s3 + $0x8] sm:$0xff]  ;;  %2417 = vmatprep.subr.bf16.mxu0 %v2604_v3  ;;  %2423 = vmatprep.subr.bf16.mxu1 %v2604_v3  ;;  %v71_v6 = vld [vmem:[%s3012_s3 + $0x10] sm:$0xff] }
   0x2   :  { %v65_v2 = vld [vmem:[%s3011_s2] sm:$0xff]  ;;  %v2671_v4 = vpack.c.bf16 %v70_v1, %v69_v0  ;;  %v66_v5 = vld [vmem:[%s3011_s2 + $0x8] sm:$0xff]  ;;  %v72_v7 = vld [vmem:[%s3012_s3 + $0x18] sm:$0xff]  ;;  %2220 = vmatprep.mubr.msk.f32.mxu0 %vm2605_vm0, %v2606_v11  ;;  %2231 = vmatprep.mubr.msk.f32.mxu1 %vm2605_vm0, %v2606_v11 }
   0x3   :  { %v2683_v8 = vpack.c.bf16 %v66_v5, %v65_v2  ;;  %v67_v9 = vld [vmem:[%s3011_s2 + $0x10] sm:$0xff]  ;;  %v68_v10 = vld [vmem:[%s3011_s2 + $0x18] sm:$0xff]  ;;  %v2696_v12 = vpack.c.bf16 %v72_v7, %v71_v6  ;;  %v73_v14 = vld [vmem:[%s3013_s4] sm:$0xff] }
   0x4   :  { %2419 = vmatpush3.bf16.msra.mxu0 %v2671_v4  ;;  %v2700_v13 = vpack.c.bf16 %v68_v10, %v67_v9  ;;  %v74_v15 = vld [vmem:[%s3013_s4 + $0x8] sm:$0xff] }
   0x5   :  { %2425 = vmatpush3.bf16.msra.mxu1 %v2683_v8  ;;  %2420 = vmatprep.subr.bf16.mxu0 %v2604_v3 }
   0x6   :  { %14 = vsyncpa [#allocation3], 0  ;;  %2426 = vmatprep.subr.bf16.mxu1 %v2604_v3  ;;  %v2710_v16 = vpack.c.bf16 %v74_v15, %v73_v14  ;;  %v75_v17 = vld [vmem:[%s3013_s4 + $0x10] sm:$0xff]  ;;  %v76_v18 = vld [vmem:[%s3013_s4 + $0x18] sm:$0xff]  ;;  %s2607_s11 = smov 64   ;;  %vm84_vm1 = vcmask 261120   ;;  %v44_v50 = vlaneseq }
   0x7   :  { %v2724_v19 = vpack.c.bf16 %v76_v18, %v75_v17  ;;  %v2739_v25 = vld [vmem:[%s3014_s5] ss:$0 sm:$0xff]  ;;  %s2608_s5 = smov 32   ;;  %v34_v41 = vld [vmem:[%s3009_s0 + $0x8] sm:$0xff]  ;;  %v35_v42 = vld [vmem:[%s3009_s0 + $0x10] sm:$0xff]  ;;  %vm515_vm3 = vcmask 122880  }
   0x8   :  { %2422 = vmatpush3.bf16.msra.mxu0 %v2696_v12  ;;  %v33_v40 = vld [vmem:[%s3009_s0] sm:$0xff]  ;;  %vm2760_vm2 = vmpackc.low %vm84_vm1, %vm84_vm1  ;;  %v36_v45 = vld [vmem:[%s3009_s0 + $0x18] sm:$0xff]  ;;  %v2609_v48 = vmov 1966171168   ;;  %v45_v52 = vshrl.u32 %v44_v50, 7  ;;  %vm528_vm4 = vcmask 130048  }
   0x9   :  { %2428 = vmatpush3.bf16.msra.mxu1 %v2700_v13  ;;  %2429 = vmatprep.subr.bf16.mxu0 %v2604_v3  ;;  %v2756_v43 = vpack.c.bf16 %v34_v41, %v33_v40  ;;  %v2767_v47 = vpack.c.bf16 %v36_v45, %v35_v42  ;;  %v42_v49 = vunpack.c.l.s4 %v2609_v48  ;;  %v37_v1 = vld [vmem:[%s3010_s1] sm:$0x3]  ;;  %vm698_vm5 = vcmask 1041409  }
   0xa   :  { %2435 = vmatprep.subr.bf16.mxu1 %v2604_v3  ;;  %v2784_v57 = vsub.s32 0, %v45_v52  ;;  %v38_v2 = vsub.f32 1.0, %v37_v1  ;;  %vm2068_vm6 = vcmask 254976  }
   0xb   :  { %2221 = vmatmul.mubr.f32.vlgmr.msra.gmra.mrb[0].mxu0 %v2606_v11  ;;  %v43_v51 = vunpack.c.0.s8 %v42_v49 }
   0xc   :  { %2232 = vmatmul.mubr.f32.vlgmr.msra.gmra.mrb[0].mxu1 %v2606_v11  ;;  %2431 = vmatpush3.bf16.msra.mxu0 %v2710_v16  ;;  %v39_v5 = vmul.f32 -1e+30, %v38_v2 }
   0xd   :  { %2432 = vmatprep.subr.bf16.mxu0 %v2604_v3  ;;  %2242 = vmatprep.mubr.msk.f32.mxu0 %vm2605_vm0, %v2606_v11  ;;  %v2778_v53 = vsub.s32 %v43_v51, %v45_v52 }
   0xe   :  { %2249 = vmatprep.mubr.msk.f32.mxu1 %vm2605_vm0, %v2606_v11 }
   0xf   :  { %v47_v6 = vrot.slane %v39_v5, %v2778_v53 }
  0x10   :  { %2434 = vmatpush3.bf16.msra.mxu0 %v2724_v19 }
  0x11   :  { %2439 = vmatprep.subr.bf16.mxu0 %v2604_v3  ;;  %v48_v7 = vcombine.high %v47_v6, %v47_v6  ;;  %v2809_v9 = vrot.slane %v47_v6, %v2778_v53 }
  0x12   :  { %2438 = vmatpush3.bf16.xpose.msk.msra.mxu1 %vm2760_vm2, %v2756_v43 }
  0x13   :  { %2243 = vmatmul.mubr.f32.vlgmr.msra.gmra.mrb[2].mxu0 %v2606_v11  ;;  %2443 = vmatprep.subr.bf16.mxu1 %v2604_v3  ;;  %v2812_v10 = vrot.slane %v48_v7, %v2778_v53 }
  0x14   :  { %2256 = vmatprep.mubr.msk.f32.mxu0 %vm2605_vm0, %v2606_v11 }
  0x19   :  { %2442 = vmatpush3.bf16.xpose.msk.msra.mxu0 %vm2760_vm2, %v2767_v47 }
  0x1a   :  { %2449 = vmatprep.subr.bf16.mxu0 %v2604_v3 }
  0xde   :  { %v154_v20 = vpop.f32.mrb[0].mxu0 }
  0xdf   :  { %v2222_v21 = vpop.f32.mrb[1].mxu0  ;;  %v224_v22 = vpop.f32.mrb[0].mxu1 }
  0xe0   :  { %v225_v23 = vadd.f32 %v224_v22, %v154_v20  ;;  %v2233_v24 = vpop.f32.mrb[1].mxu1 }
  0xe6   :  { %v294_v26 = vpop.f32.mrb[2].mxu0 }
  0xe7   :  { %v298_v27 = vadd.f32 %v294_v26, %v225_v23  ;;  %v2244_v28 = vpop.f32.mrb[3].mxu0 }
  0xe9   :  { %v299_v29 = vadd.f32 %v2739_v25, %v298_v27 }
  0xeb   :  { %2532 = vtanh.f32 %v299_v29  ;;  %v2085_v31 = vmul.f32 -1.442695, %v299_v29 }
  0xed   :  { %2534 = vpow2.f32 %v2085_v31 }
  0xf5   :  { %v2533_v30 = vpop.eup %2532 }
  0xf6   :  { %309 = vrot.lane.b32.xlu0 %v2533_v30, %s2607_s11 }
  0xf7   :  { %v2535_v32 = vpop.eup %2534 }
  0xf8   :  { %v303_v33 = vadd.f32 1.0, %v2535_v32 }
  0xfa   :  { %2536 = vrcp.f32 %v303_v33 }
 0x104   :  { %v2537_v34 = vpop.eup %2536 }
 0x105   :  { %v307_v37 = vmul.f32 0.0, %v2537_v34 }
 0x168   :  { %v310_v35 = vpop.permute.xlu0 %309 }
 0x169   :  { %v312_v36 = vmul.f32 %v2537_v34, %v310_v35 }
 0x16b   :  { %314 = vrot.lane.b32.xlu0 %v312_v36, %s2608_s5 }
 0x1dd   :  { %v315_v38 = vpop.permute.xlu0 %314 }
 0x1de   :  { %v2744_v39 = vadd.f32 %v315_v38, %v307_v37 }
 0x1e0   :  { %2538 = vtanh.f32 %v2744_v39 }
 0x1ea   :  { %v2539_v46 = vpop.eup %2538 }
 0x1eb   :  { %320 = vrot.lane.b32.xlu1 %v2539_v46, %s2607_s11 }
 0x25d   :  { %v321_v54 = vpop.permute.xlu1 %320 }
 0x25e   :  { %v2780_v55 = vmul.f32 %v2537_v34, %v321_v54 }
 0x260   :  { %v331_v56 = vrot.slane %v2780_v55, %v2778_v53 }
 0x262   :  { %v332_v58 = vcombine.high %v331_v56, %v331_v56  ;;  %v339_v59 = vrot.slane %v331_v56, %v2778_v53 }
 0x264   :  { %v350_v60 = vrot.slane %v339_v59, %v2784_v57  ;;  %v346_v61 = vrot.slane %v332_v58, %v2778_v53 }
 0x266   :  { %351 = vrot.lane.b32.xlu1 %v350_v60, %s2608_s5  ;;  %v434_v62 = vrot.slane %v346_v61, %v2784_v57 }
 0x268   :  { %435 = vrot.lane.b32.xlu0 %v434_v62, %s2608_s5 }
 0x2d8   :  { %v352_v63 = vpop.permute.xlu1 %351 }
 0x2d9   :  { %2250 = vmatmul.mubr.msk.f32.vlgmr.msra.gmra.mrb[2].mxu1 %vm84_vm1, %v352_v63 }
 0x2da   :  { %v436_v0 = vpop.permute.xlu0 %435  ;;  %2445 = vmatpush3.bf16.msra.mxu1 %v2756_v43  ;;  %2263 = vmatprep.mubr.msk.f32.mxu1 %vm2605_vm0, %v2606_v11 }
 0x2db   :  { %2257 = vmatmul.mubr.msk.f32.vlgmr.msra.gmra.mrb[4].mxu0 %vm84_vm1, %v436_v0  ;;  %2446 = vmatprep.subr.bf16.mxu1 %v2604_v3 }
 0x2dc   :  { %2451 = vmatpush3.bf16.msra.mxu0 %v2671_v4  ;;  %2281 = vmatprep.mubr.msk.f32.mxu0 %vm2605_vm0, %v2606_v11 }
 0x2dd   :  { %2452 = vmatprep.subr.bf16.mxu0 %v2604_v3 }
 0x2e0   :  { %2454 = vmatpush3.bf16.msra.mxu0 %v2696_v12 }
 0x2e1   :  { %2461 = vmatprep.subr.bf16.mxu0 %v2604_v3 }
 0x3ac   :  { %v427_v14 = vpop.f32.mrb[2].mxu1 }
 0x3ad   :  { %v428_v15 = vadd.f32 %v427_v14, %v2809_v9  ;;  %v2251_v17 = vpop.f32.mrb[3].mxu1 }
 0x3ae   :  { %v511_v18 = vpop.f32.mrb[4].mxu0 }
 0x3af   :  { %v512_v20 = vadd.f32 %v511_v18, %v2812_v10  ;;  %v2258_v21 = vpop.f32.mrb[5].mxu0  ;;  %v516_v22 = vsel %vm515_vm3, %v428_v15, -inf }
 0x3b0   :  { %517 = vmax.xlane.f32.xlu1 %v516_v22 }
 0x3b1   :  { %v519_v23 = vsel %vm515_vm3, %v512_v20, -inf }
 0x3b2   :  { %520 = vmax.xlane.f32.xlu0 %v519_v23 }
 0x43d   :  { %v518_v24 = vpop.xlane.xlu1 %517 }
 0x43e   :  { %v522_v26 = vsub.f32 %v428_v15, %v518_v24 }
 0x43f   :  { %v521_v27 = vpop.xlane.xlu0 %520 }
 0x440   :  { %v524_v28 = vmul.f32 1.442695, %v522_v26  ;;  %v523_v29 = vsub.f32 %v512_v20, %v521_v27 }
 0x442   :  { %2540 = vpow2.f32 %v524_v28  ;;  %v526_v30 = vmul.f32 1.442695, %v523_v29 }
 0x444   :  { %2542 = vpow2.f32 %v526_v30 }
 0x44c   :  { %v2541_v31 = vpop.eup %2540 }
 0x44d   :  { %2264 = vmatmul.mubr.msk.f32.vlgmr.msra.gmra.mrb[4].mxu1 %vm528_vm4, %v2541_v31  ;;  %v675_v32 = vsel %vm515_vm3, %v2541_v31, 0.0 }
 0x44e   :  { %v2543_v33 = vpop.eup %2542  ;;  %2448 = vmatpush3.bf16.msra.mxu1 %v2767_v47  ;;  %676 = vadd.xlane.f32.xlu1 %v675_v32 }
 0x44f   :  { %v678_v34 = vsel %vm515_vm3, %v2543_v33, 0.0  ;;  %2270 = vmatprep.mubr.msk.f32.mxu1 %vm2605_vm0, %v2606_v11  ;;  %2455 = vmatprep.subr.bf16.mxu1 %v2604_v3 }
 0x450   :  { %679 = vadd.xlane.f32.xlu0 %v678_v34 }
 0x451   :  { %2271 = vmatmul.mubr.msk.f32.vlgmr.msra.gmra.mrb[6].mxu1 %vm528_vm4, %v2543_v33 }
 0x452   :  { %2457 = vmatpush3.bf16.msra.mxu1 %v2683_v8  ;;  %2292 = vmatprep.mubr.msk.f32.mxu1 %vm2605_vm0, %v2606_v11 }
 0x453   :  { %2458 = vmatprep.subr.bf16.mxu1 %v2604_v3 }
 0x456   :  { %2460 = vmatpush3.bf16.msra.mxu1 %v2700_v13 }
 0x457   :  { %2467 = vmatprep.subr.bf16.mxu1 %v2604_v3 }
 0x466   :  { %772 = vrot.lane.b32.xlu0 %v2780_v55, %s2608_s5 }
 0x4db   :  { %v677_v37 = vpop.xlane.xlu1 %676 }
 0x4dc   :  { %v681_v40 = vmax.f32 %v677_v37, 1e-20 }
 0x4dd   :  { %v680_v35 = vpop.xlane.xlu0 %679 }
 0x4de   :  { %v682_v38 = vmax.f32 %v680_v35, 1e-20 }
 0x4e0   :  { %2544 = vrcp.f32 %v682_v38 }
 0x4e1   :  { %v773_v36 = vpop.permute.xlu0 %772  ;;  %2546 = vrcp.f32 %v681_v40 }
 0x4e2   :  { %2293 = vmatmul.mubr.msk.f32.vlgmr.msra.gmra.mrb[8].mxu1 %vm84_vm1, %v773_v36 }
 0x4e3   :  { %2470 = vmatpush3.bf16.xpose.msk.msra.mxu1 %vm2760_vm2, %v2756_v43  ;;  %2310 = vmatprep.mubr.msk.f32.mxu1 %vm2605_vm0, %v2606_v11 }
 0x4e4   :  { %2475 = vmatprep.subr.bf16.mxu1 %v2604_v3 }
 0x4ea   :  { %v2545_v41 = vpop.eup %2544 }
 0x4eb   :  { %v2547_v46 = vpop.eup %2546  ;;  %v692_v48 = vrot.slane %v2545_v41, %v2784_v57 }
 0x4ec   :  { %v688_v50 = vrot.slane %v2547_v46, %v2784_v57 }
 0x520   :  { %v598_v42 = vpop.f32.mrb[4].mxu1 }
 0x521   :  { %v2265_v45 = vpop.f32.mrb[5].mxu1  ;;  %v693_v54 = vmul.f32 %v688_v50, %v598_v42 }
 0x524   :  { %v671_v49 = vpop.f32.mrb[6].mxu1 }
 0x525   :  { %v694_v51 = vmul.f32 %v692_v48, %v671_v49  ;;  %v2272_v52 = vpop.f32.mrb[7].mxu1 }
 0x527   :  { %v697_v55 = vrot.slane %v694_v51, 7 }
 0x529   :  { %v699_v56 = vsel %vm698_vm5, %v697_v55, %v693_v54 }
 0x52a   :  { %2282 = vmatmul.mubr.msk.f32.vlgmr.msra.gmra.mrb[6].mxu0 %vm84_vm1, %v699_v56 }
 0x52b   :  { %2463 = vmatpush3.bf16.msra.mxu0 %v2710_v16  ;;  %2303 = vmatprep.mubr.msk.f32.mxu0 %vm2605_vm0, %v2606_v11 }
 0x52c   :  { %2464 = vmatprep.subr.bf16.mxu0 %v2604_v3 }
 0x52f   :  { %2466 = vmatpush3.bf16.msra.mxu0 %v2724_v19 }
 0x530   :  { %2471 = vmatprep.subr.bf16.mxu0 %v2604_v3 }
 0x532   :  { %2304 = vmatmul.mubr.msk.f32.vlgmr.msra.gmra.mrb[8].mxu0 %vm84_vm1, %v773_v36 }
 0x533   :  { %2317 = vmatprep.mubr.msk.f32.mxu0 %vm2605_vm0, %v2606_v11 }
 0x538   :  { %2474 = vmatpush3.bf16.xpose.msk.msra.mxu0 %vm2760_vm2, %v2767_v47 }
 0x539   :  { %2481 = vmatprep.subr.bf16.mxu0 %v2604_v3 }
 0x5b5   :  { %v842_v58 = vpop.f32.mrb[8].mxu1 }
 0x5b6   :  { %v2294_v59 = vpop.f32.mrb[9].mxu1 }
 0x5fd   :  { %v768_v60 = vpop.f32.mrb[6].mxu0 }
 0x5fe   :  { %v843_v61 = vadd.f32 %v842_v58, %v768_v60  ;;  %v2283_v62 = vpop.f32.mrb[7].mxu0 }
 0x605   :  { %v912_v63 = vpop.f32.mrb[8].mxu0 }
 0x606   :  { %v916_v0 = vadd.f32 %v912_v63, %v843_v61  ;;  %v2305_v1 = vpop.f32.mrb[9].mxu0 }
 0x608   :  { %v917_v2 = vadd.f32 %v2739_v25, %v916_v0 }
 0x60a   :  { %2548 = vtanh.f32 %v917_v2  ;;  %v2097_v6 = vmul.f32 -1.442695, %v917_v2 }
 0x60c   :  { %2550 = vpow2.f32 %v2097_v6 }
 0x614   :  { %v2549_v5 = vpop.eup %2548 }
 0x615   :  { %927 = vrot.lane.b32.xlu1 %v2549_v5, %s2607_s11 }
 0x616   :  { %v2551_v7 = vpop.eup %2550 }
 0x617   :  { %v921_v14 = vadd.f32 1.0, %v2551_v7 }
 0x619   :  { %2552 = vrcp.f32 %v921_v14 }
 0x623   :  { %v2553_v15 = vpop.eup %2552 }
 0x624   :  { %v925_v20 = vmul.f32 %v2553_v15, %v2744_v39 }
 0x687   :  { %v928_v17 = vpop.permute.xlu1 %927 }
 0x688   :  { %v930_v18 = vmul.f32 %v2553_v15, %v928_v17 }
 0x68a   :  { %932 = vrot.lane.b32.xlu1 %v930_v18, %s2608_s5 }
 0x6fc   :  { %v933_v21 = vpop.permute.xlu1 %932 }
 0x6fd   :  { %v2862_v22 = vadd.f32 %v933_v21, %v925_v20 }
 0x6ff   :  { %2554 = vtanh.f32 %v2862_v22 }
 0x709   :  { %v2555_v23 = vpop.eup %2554 }
 0x70a   :  { %938 = vrot.lane.b32.xlu0 %v2555_v23, %s2607_s11 }
 0x77c   :  { %v939_v24 = vpop.permute.xlu0 %938 }
 0x77d   :  { %v941_v26 = vmul.f32 %v2553_v15, %v939_v24 }
 0x77f   :  { %v949_v27 = vrot.slane %v941_v26, %v2778_v53 }
 0x781   :  { %v950_v28 = vcombine.high %v949_v27, %v949_v27  ;;  %v957_v29 = vrot.slane %v949_v27, %v2778_v53 }
 0x783   :  { %v968_v30 = vrot.slane %v957_v29, %v2784_v57  ;;  %v964_v31 = vrot.slane %v950_v28, %v2778_v53 }
 0x785   :  { %969 = vrot.lane.b32.xlu1 %v968_v30, %s2608_s5  ;;  %v1046_v39 = vrot.slane %v964_v31, %v2784_v57 }
 0x787   :  { %1047 = vrot.lane.b32.xlu0 %v1046_v39, %s2608_s5 }
 0x7f7   :  { %v970_v32 = vpop.permute.xlu1 %969 }
 0x7f8   :  { %2311 = vmatmul.mubr.msk.f32.vlgmr.msra.gmra.mrb[10].mxu1 %vm84_vm1, %v970_v32 }
 0x7f9   :  { %v1048_v33 = vpop.permute.xlu0 %1047  ;;  %2477 = vmatpush3.bf16.msra.mxu1 %v2756_v43  ;;  %2324 = vmatprep.mubr.msk.f32.mxu1 %vm2605_vm0, %v2606_v11 }
 0x7fa   :  { %2318 = vmatmul.mubr.msk.f32.vlgmr.msra.gmra.mrb[10].mxu0 %vm84_vm1, %v1048_v33  ;;  %2478 = vmatprep.subr.bf16.mxu1 %v2604_v3 }
 0x7fb   :  { %2483 = vmatpush3.bf16.msra.mxu0 %v2671_v4  ;;  %2342 = vmatprep.mubr.msk.f32.mxu0 %vm2605_vm0, %v2606_v11 }
 0x7fc   :  { %2484 = vmatprep.subr.bf16.mxu0 %v2604_v3 }
 0x7ff   :  { %2486 = vmatpush3.bf16.msra.mxu0 %v2696_v12 }
 0x800   :  { %2493 = vmatprep.subr.bf16.mxu0 %v2604_v3 }
 0x8cb   :  { %v1039_v34 = vpop.f32.mrb[10].mxu1 }
 0x8cc   :  { %v1040_v35 = vadd.f32 %v1039_v34, %v2809_v9  ;;  %v2312_v36 = vpop.f32.mrb[11].mxu1 }
 0x8cd   :  { %v1117_v37 = vpop.f32.mrb[10].mxu0 }
 0x8ce   :  { %v1118_v38 = vadd.f32 %v1117_v37, %v2812_v10  ;;  %v2319_v40 = vpop.f32.mrb[11].mxu0  ;;  %v1121_v41 = vsel %vm515_vm3, %v1040_v35, -inf }
 0x8cf   :  { %1122 = vmax.xlane.f32.xlu1 %v1121_v41 }
 0x8d0   :  { %v1124_v4 = vsel %vm515_vm3, %v1118_v38, -inf }
 0x8d1   :  { %1125 = vmax.xlane.f32.xlu0 %v1124_v4 }
 0x95c   :  { %v1123_v42 = vpop.xlane.xlu1 %1122 }
 0x95d   :  { %v1127_v45 = vsub.f32 %v1040_v35, %v1123_v42 }
 0x95e   :  { %v1126_v46 = vpop.xlane.xlu0 %1125 }
 0x95f   :  { %v1129_v12 = vmul.f32 1.442695, %v1127_v45  ;;  %v1128_v48 = vsub.f32 %v1118_v38, %v1126_v46 }
 0x961   :  { %2556 = vpow2.f32 %v1129_v12  ;;  %v1131_v49 = vmul.f32 1.442695, %v1128_v48 }
 0x963   :  { %2558 = vpow2.f32 %v1131_v49 }
 0x96b   :  { %v2557_v50 = vpop.eup %2556 }
 0x96c   :  { %2325 = vmatmul.mubr.msk.f32.vlgmr.msra.gmra.mrb[12].mxu1 %vm528_vm4, %v2557_v50  ;;  %v1279_v51 = vsel %vm515_vm3, %v2557_v50, 0.0 }
 0x96d   :  { %v2559_v52 = vpop.eup %2558  ;;  %2480 = vmatpush3.bf16.msra.mxu1 %v2767_v47  ;;  %1280 = vadd.xlane.f32.xlu1 %v1279_v51 }
 0x96e   :  { %v1282_v54 = vsel %vm515_vm3, %v2559_v52, 0.0  ;;  %2331 = vmatprep.mubr.msk.f32.mxu1 %vm2605_vm0, %v2606_v11  ;;  %2487 = vmatprep.subr.bf16.mxu1 %v2604_v3 }
 0x96f   :  { %1283 = vadd.xlane.f32.xlu0 %v1282_v54 }
 0x970   :  { %2332 = vmatmul.mubr.msk.f32.vlgmr.msra.gmra.mrb[14].mxu1 %vm528_vm4, %v2559_v52 }
 0x971   :  { %2489 = vmatpush3.bf16.msra.mxu1 %v2683_v8  ;;  %2353 = vmatprep.mubr.msk.f32.mxu1 %vm2605_vm0, %v2606_v11 }
 0x972   :  { %2490 = vmatprep.subr.bf16.mxu1 %v2604_v3 }
 0x975   :  { %2492 = vmatpush3.bf16.msra.mxu1 %v2700_v13 }
 0x976   :  { %2499 = vmatprep.subr.bf16.mxu1 %v2604_v3 }
 0x985   :  { %1375 = vrot.lane.b32.xlu0 %v941_v26, %s2608_s5 }
 0x9fa   :  { %v1281_v8 = vpop.xlane.xlu1 %1280 }
 0x9fb   :  { %v1285_v13 = vmax.f32 %v1281_v8, 1e-20 }
 0x9fc   :  { %v1284_v55 = vpop.xlane.xlu0 %1283 }
 0x9fd   :  { %v1286_v58 = vmax.f32 %v1284_v55, 1e-20 }
 0x9ff   :  { %2560 = vrcp.f32 %v1286_v58 }
 0xa00   :  { %v1376_v56 = vpop.permute.xlu0 %1375  ;;  %2562 = vrcp.f32 %v1285_v13 }
 0xa01   :  { %2354 = vmatmul.mubr.msk.f32.vlgmr.msra.gmra.mrb[16].mxu1 %vm84_vm1, %v1376_v56 }
 0xa02   :  { %2502 = vmatpush3.bf16.xpose.msk.msra.mxu1 %vm2760_vm2, %v2756_v43  ;;  %2371 = vmatprep.mubr.msk.f32.mxu1 %vm2605_vm0, %v2606_v11 }
 0xa03   :  { %2507 = vmatprep.subr.bf16.mxu1 %v2604_v3 }
 0xa09   :  { %v2561_v59 = vpop.eup %2560 }
 0xa0a   :  { %v2563_v62 = vpop.eup %2562  ;;  %v1296_v63 = vrot.slane %v2561_v59, %v2784_v57  ;;  %v1902_v59 = vld [vmem:[%s3015_s6] sm:$0xff] }
 0xa0b   :  { %v1292_v1 = vrot.slane %v2563_v62, %v2784_v57 }
 0xa3f   :  { %v1202_v60 = vpop.f32.mrb[12].mxu1 }
 0xa40   :  { %v2326_v61 = vpop.f32.mrb[13].mxu1  ;;  %v1297_v6 = vmul.f32 %v1292_v1, %v1202_v60 }
 0xa41   :  { %v1904_v61 = vld [vmem:[%s3015_s6 + $0x10] sm:$0xff] }
 0xa43   :  { %v1275_v0 = vpop.f32.mrb[14].mxu1 }
 0xa44   :  { %v1298_v2 = vmul.f32 %v1296_v63, %v1275_v0  ;;  %v2333_v5 = vpop.f32.mrb[15].mxu1  ;;  %v1906_v63 = vld [vmem:[%s3016_s7] sm:$0xff]  ;;  %v1907_v0 = vld [vmem:[%s3016_s7 + $0x8] sm:$0xff] }
 0xa45   :  { %v2514_v1 = vpack.c.bf16 %v1907_v0, %v1906_v63  ;;  %v1909_v5 = vld [vmem:[%s3016_s7 + $0x18] sm:$0xff] }
 0xa46   :  { %v1301_v7 = vrot.slane %v1298_v2, 7  ;;  %v1908_v2 = vld [vmem:[%s3016_s7 + $0x10] sm:$0xff] }
 0xa48   :  { %v1302_v14 = vsel %vm698_vm5, %v1301_v7, %v1297_v6  ;;  %v2517_v6 = vpack.c.bf16 %v1909_v5, %v1908_v2 }
 0xa49   :  { %2343 = vmatmul.mubr.msk.f32.vlgmr.msra.gmra.mrb[12].mxu0 %vm84_vm1, %v1302_v14 }
 0xa4a   :  { %2495 = vmatpush3.bf16.msra.mxu0 %v2710_v16  ;;  %2364 = vmatprep.mubr.msk.f32.mxu0 %vm2605_vm0, %v2606_v11 }
 0xa4b   :  { %2496 = vmatprep.subr.bf16.mxu0 %v2604_v3 }
 0xa4e   :  { %2498 = vmatpush3.bf16.msra.mxu0 %v2724_v19 }
 0xa4f   :  { %2503 = vmatprep.subr.bf16.mxu0 %v2604_v3 }
 0xa51   :  { %2365 = vmatmul.mubr.msk.f32.vlgmr.msra.gmra.mrb[14].mxu0 %vm84_vm1, %v1376_v56 }
 0xa52   :  { %2378 = vmatprep.mubr.msk.f32.mxu0 %vm2605_vm0, %v2606_v11 }
 0xa57   :  { %2506 = vmatpush3.bf16.xpose.msk.msra.mxu0 %vm2760_vm2, %v2767_v47 }
 0xa58   :  { %2513 = vmatprep.subr.bf16.mxu0 %v2604_v3 }
 0xad4   :  { %v1445_v16 = vpop.f32.mrb[16].mxu1 }
 0xad5   :  { %v2355_v15 = vpop.f32.mrb[17].mxu1 }
 0xb1c   :  { %v1371_v17 = vpop.f32.mrb[12].mxu0 }
 0xb1d   :  { %v1446_v18 = vadd.f32 %v1445_v16, %v1371_v17  ;;  %v2344_v20 = vpop.f32.mrb[13].mxu0 }
 0xb24   :  { %v1515_v21 = vpop.f32.mrb[14].mxu0 }
 0xb25   :  { %v1519_v19 = vadd.f32 %v1515_v21, %v1446_v18  ;;  %v2366_v23 = vpop.f32.mrb[15].mxu0 }
 0xb27   :  { %v1520_v24 = vadd.f32 %v2739_v25, %v1519_v19 }
 0xb29   :  { %2564 = vtanh.f32 %v1520_v24  ;;  %v2109_v27 = vmul.f32 -1.442695, %v1520_v24 }
 0xb2b   :  { %2566 = vpow2.f32 %v2109_v27 }
 0xb33   :  { %v2565_v26 = vpop.eup %2564 }
 0xb34   :  { %1530 = vrot.lane.b32.xlu1 %v2565_v26, %s2607_s11 }
 0xb35   :  { %v2567_v44 = vpop.eup %2566 }
 0xb36   :  { %v1524_v28 = vadd.f32 1.0, %v2567_v44 }
 0xb38   :  { %2568 = vrcp.f32 %v1524_v28 }
 0xb42   :  { %v2569_v29 = vpop.eup %2568 }
 0xb43   :  { %v1528_v39 = vmul.f32 %v2569_v29, %v2862_v22 }
 0xba6   :  { %v1531_v30 = vpop.permute.xlu1 %1530 }
 0xba7   :  { %v1533_v31 = vmul.f32 %v2569_v29, %v1531_v30 }
 0xba9   :  { %1535 = vrot.lane.b32.xlu1 %v1533_v31, %s2608_s5 }
 0xc1b   :  { %v1536_v32 = vpop.permute.xlu1 %1535 }
 0xc1c   :  { %v1538_v33 = vadd.f32 %v1536_v32, %v1528_v39  ;;  %v2120_v32 = vld [vmem:[%s3017_s8] ss:$0 sm:$0xff] }
 0xc1e   :  { %2570 = vtanh.f32 %v1538_v33 }
 0xc28   :  { %v2571_v25 = vpop.eup %2570 }
 0xc29   :  { %1541 = vrot.lane.b32.xlu0 %v2571_v25, %s2607_s11 }
 0xc9b   :  { %v1542_v34 = vpop.permute.xlu0 %1541 }
 0xc9c   :  { %v1544_v35 = vmul.f32 %v2569_v29, %v1542_v34 }
 0xc9e   :  { %v1552_v36 = vrot.slane %v1544_v35, %v2778_v53 }
 0xca0   :  { %v1553_v37 = vcombine.high %v1552_v36, %v1552_v36  ;;  %v1560_v38 = vrot.slane %v1552_v36, %v2778_v53 }
 0xca2   :  { %v1571_v40 = vrot.slane %v1560_v38, %v2784_v57  ;;  %v1567_v41 = vrot.slane %v1553_v37, %v2778_v53 }
 0xca4   :  { %1572 = vrot.lane.b32.xlu1 %v1571_v40, %s2608_s5  ;;  %v1649_v22 = vrot.slane %v1567_v41, %v2784_v57 }
 0xca6   :  { %1650 = vrot.lane.b32.xlu0 %v1649_v22, %s2608_s5 }
 0xd16   :  { %v1573_v4 = vpop.permute.xlu1 %1572 }
 0xd17   :  { %2372 = vmatmul.mubr.msk.f32.vlgmr.msra.gmra.mrb[18].mxu1 %vm84_vm1, %v1573_v4 }
 0xd18   :  { %v1651_v42 = vpop.permute.xlu0 %1650  ;;  %2509 = vmatpush3.bf16.msra.mxu1 %v2756_v43  ;;  %2385 = vmatprep.mubr.msk.f32.mxu1 %vm2605_vm0, %v2606_v11 }
 0xd19   :  { %2379 = vmatmul.mubr.msk.f32.vlgmr.msra.gmra.mrb[16].mxu0 %vm84_vm1, %v1651_v42  ;;  %2510 = vmatprep.subr.bf16.mxu1 %v2604_v3 }
 0xd1a   :  { %2403 = vmatprep.mubr.msk.f32.mxu0 %vm2605_vm0, %v2606_v11  ;;  %2515 = vmatpush3.bf16.msra.mxu0 %v2514_v1 }
 0xd1b   :  { %2516 = vmatprep.subr.bf16.mxu0 %v2604_v3 }
 0xd1e   :  { %2518 = vmatpush3.bf16.msra.mxu0 %v2517_v6 }
 0xdea   :  { %v1642_v53 = vpop.f32.mrb[18].mxu1 }
 0xdeb   :  { %v1643_v45 = vadd.f32 %v1642_v53, %v2809_v9  ;;  %v2373_v46 = vpop.f32.mrb[19].mxu1 }
 0xdec   :  { %v1720_v12 = vpop.f32.mrb[16].mxu0 }
 0xded   :  { %v1721_v48 = vadd.f32 %v1720_v12, %v2812_v10  ;;  %v2380_v49 = vpop.f32.mrb[17].mxu0  ;;  %v1724_v43 = vsel %vm515_vm3, %v1643_v45, -inf }
 0xdee   :  { %1725 = vmax.xlane.f32.xlu1 %v1724_v43 }
 0xdef   :  { %v1727_v50 = vsel %vm515_vm3, %v1721_v48, -inf }
 0xdf0   :  { %1728 = vmax.xlane.f32.xlu0 %v1727_v50 }
 0xe7b   :  { %v1726_v51 = vpop.xlane.xlu1 %1725 }
 0xe7c   :  { %v1730_v52 = vsub.f32 %v1643_v45, %v1726_v51 }
 0xe7d   :  { %v1729_v54 = vpop.xlane.xlu0 %1728 }
 0xe7e   :  { %v1732_v55 = vmul.f32 1.442695, %v1730_v52  ;;  %v1731_v56 = vsub.f32 %v1721_v48, %v1729_v54 }
 0xe80   :  { %2572 = vpow2.f32 %v1732_v55  ;;  %v1734_v8 = vmul.f32 1.442695, %v1731_v56 }
 0xe82   :  { %2574 = vpow2.f32 %v1734_v8 }
 0xe8a   :  { %v2573_v9 = vpop.eup %2572 }
 0xe8b   :  { %2386 = vmatmul.mubr.msk.f32.vlgmr.msra.gmra.mrb[20].mxu1 %vm528_vm4, %v2573_v9  ;;  %v1882_v10 = vsel %vm515_vm3, %v2573_v9, 0.0 }
 0xe8c   :  { %v2575_v58 = vpop.eup %2574  ;;  %2512 = vmatpush3.bf16.msra.mxu1 %v2767_v47  ;;  %1883 = vadd.xlane.f32.xlu1 %v1882_v10  ;;  %v1903_v47 = vld [vmem:[%s3015_s6 + $0x8] sm:$0xff] }
 0xe8d   :  { %v1885_v13 = vsel %vm515_vm3, %v2575_v58, 0.0  ;;  %2392 = vmatprep.mubr.msk.f32.mxu1 %vm2605_vm0, %v2606_v11  ;;  %2519 = vmatprep.subr.bf16.mxu1 %v2604_v3  ;;  %v2520_v60 = vpack.c.bf16 %v1903_v47, %v1902_v59 }
 0xe8e   :  { %1886 = vadd.xlane.f32.xlu0 %v1885_v13 }
 0xe8f   :  { %2393 = vmatmul.mubr.msk.f32.vlgmr.msra.gmra.mrb[22].mxu1 %vm528_vm4, %v2575_v58 }
 0xe90   :  { %2414 = vmatprep.mubr.msk.f32.mxu1 %vm2605_vm0, %v2606_v11  ;;  %2521 = vmatpush3.bf16.msra.mxu1 %v2520_v60  ;;  %v1905_v11 = vld [vmem:[%s3015_s6 + $0x18] sm:$0xff] }
 0xe91   :  { %2522 = vmatprep.subr.bf16.mxu1 %v2604_v3  ;;  %v2523_v62 = vpack.c.bf16 %v1905_v11, %v1904_v61 }
 0xe94   :  { %2524 = vmatpush3.bf16.msra.mxu1 %v2523_v62 }
 0xea4   :  { %1986 = vrot.lane.b32.xlu0 %v1544_v35, %s2608_s5  ;;  %s2610_s5 = smov [#allocation2]  }
 0xea5   :  { %s2076_s12 = sshll.u32 %s2610_s5, 4  ;;  %s2077_s12 = int_to_ptr.vmem [resolvable:$true] %s2076_s12 }
 0xea6   :  { %s2580_s13 = scalar_lea.vmem %s2077_s12, 32  ;;  %p2585_p1 = scmp.lt.s32.totalorder %s2077_s12, %s2077_s12 }
 0xea7   :  { %p2581_p0 = scmp.ne.s32.totalorder %s2077_s12, %s2580_s13  ;;  %p2586_p2 = scmp.lt.s32.totalorder %s2580_s13, %s2580_s13 }
 0xea9   :  { %p2587_p3 = por %p2586_p2, %p2585_p1 }
 0xeab   :  { %p2588_p4 = pnand %p2587_p3, %p2581_p0 }
 0xf19   :  { %v1884_v16 = vpop.xlane.xlu1 %1883 }
 0xf1a   :  { %v1888_v17 = vmax.f32 %v1884_v16, 1e-20 }
 0xf1b   :  { %v1887_v7 = vpop.xlane.xlu0 %1886 }
 0xf1c   :  { %v1889_v15 = vmax.f32 %v1887_v7, 1e-20 }
 0xf1e   :  { %2576 = vrcp.f32 %v1889_v15 }
 0xf1f   :  { %v1987_v14 = vpop.permute.xlu0 %1986  ;;  %2578 = vrcp.f32 %v1888_v17 }
 0xf20   :  { %2415 = vmatmul.mubr.msk.f32.vlgmr.msra.gmra.mrb[24].mxu1 %vm84_vm1, %v1987_v14 }
 0xf28   :  { %v2577_v3 = vpop.eup %2576 }
 0xf29   :  { %v2579_v21 = vpop.eup %2578  ;;  %v1899_v19 = vrot.slane %v2577_v3, %v2784_v57 }
 0xf2a   :  { %v1895_v24 = vrot.slane %v2579_v21, %v2784_v57 }
 0xf5e   :  { %v1805_v18 = vpop.f32.mrb[20].mxu1 }
 0xf5f   :  { %v2387_v20 = vpop.f32.mrb[21].mxu1  ;;  %v1900_v44 = vmul.f32 %v1895_v24, %v1805_v18 }
 0xf62   :  { %v1878_v23 = vpop.f32.mrb[22].mxu1 }
 0xf63   :  { %v1901_v26 = vmul.f32 %v1899_v19, %v1878_v23  ;;  %v2394_v27 = vpop.f32.mrb[23].mxu1 }
 0xf65   :  { %v1912_v28 = vrot.slane %v1901_v26, 7 }
 0xf67   :  { %v1913_v29 = vsel %vm698_vm5, %v1912_v28, %v1900_v44 }
 0xf68   :  { %2404 = vmatmul.mubr.msk.f32.vlgmr.msra.gmra.mrb[18].mxu0 %vm84_vm1, %v1913_v29 }
 0xff3   :  { %v2056_v30 = vpop.f32.mrb[24].mxu1 }
 0xff4   :  { %v2416_v31 = vpop.f32.mrb[25].mxu1 }
0x103b   :  { %v1982_v39 = vpop.f32.mrb[18].mxu0 }
0x103c   :  { %v2057_v33 = vadd.f32 %v2056_v30, %v1982_v39  ;;  %v2405_v25 = vpop.f32.mrb[19].mxu0 }
0x103e   :  { %v2067_v57 = vadd.f32 %v2120_v32, %v2057_v33 }
0x1040   :  { %2069 = vst.msk [vmem:[#allocation2] sm:$0x3] %vm2068_vm6, %v2067_v57 }
0x1041   :  { %2591 = shalt.err (!%p2588_p4)
}
0x1042   :  { %s2592_s16 = scalar_lea.hbm %s3018_s9, 32 }
0x1043   :  { %p2593_p5 = scmp.ne.s32.totalorder %s3018_s9, %s2592_s16  ;;  %p2596_p6 = scmp.lt.u32.totalorder %s2592_s16, %s3018_s9 }
0x1045   :  { %p2598_p7 = pnand %p2596_p6, %p2593_p5 }
0x1047   :  { %2601 = shalt.err (!%p2598_p7)
}
0x1048   :  { %2079 = dma.vmem_to_hbm [thread:$0]  %s2077_s12, 32, %s3018_s9, [#allocation3]  }
0x1049   :  { %2602 = dma.done.wait [#allocation3], 32  }
0x104a   :  { %2603 = vsyncadd [#allocation3], 4294967264 }
0x104b   :  { %2083 = vsyncpa [#allocation3], 1 }

</bundles_post_ra>
